<compile_context>
chip_gen: v7x
topology: tpu7x:2x2x1
jax: 0.10.0
libtpu: 0.0.40
codegen_flags: <defaults>
</compile_context>

<pallas_src>
import functools

import jax
import jax.numpy as jnp
from jax import lax
from jax.experimental import pallas as pl
from jax.experimental.pallas import tpu as pltpu


def _cheb_kernel(x_ref, att_ref, cheb_ref, theta_ref, out_ref, *, K):
    # x_ref:     (1, N, F_in*T)        per-batch graph signal, columns = (f, t), t minor
    # att_ref:   (1, N, N)             spatial attention for this batch
    # cheb_ref:  (K, N, N)             Chebyshev polynomials (grid-invariant)
    # theta_ref: (K, F_in*T, F_out*T)  kron(Theta_k, I_T) (grid-invariant)
    # out_ref:   (1, N, F_out*T)       output, columns = (o, t), t minor
    g = x_ref[0]          # (N, F_in*T)
    att = att_ref[0]      # (N, N)

    acc = jnp.zeros(out_ref.shape[1:], dtype=jnp.float32)
    for k in range(K):    # K is small & static -> unrolled
        # attention-masked Chebyshev polynomial: built once per (batch, k)
        a_k = cheb_ref[k] * att                                    # (N, N)  VPU
        # rhs[m, (f,t)] = sum_n a_k[n, m] * g[n, (f,t)]  == a_k^T @ g
        # (contract lhs dim 0 so the MXU consumes the transposed operand;
        #  no explicit XLU transpose, T folded into the matmul lanes)
        rhs = lax.dot_general(a_k, g, (((0,), (0,)), ((), ())),
                              preferred_element_type=jnp.float32)  # (N, F_in*T)
        # apply Theta_k to all T time steps at once via kron(Theta_k, I_T)
        acc = acc + lax.dot_general(rhs, theta_ref[k],
                                    (((1,), (0,)), ((), ())),
                                    preferred_element_type=jnp.float32)
    # fused ReLU + store (single unmasked row-dense store per batch)
    out_ref[0] = jnp.maximum(acc, 0.0).astype(out_ref.dtype)


def cheb_conv_with_sat(x, spatial_attention, cheb_polys, theta):
    """
    x:                 (B, N, F_in, T)  float32
    spatial_attention: (B, N, N)        float32
    cheb_polys:        (K, N, N)        float32
    theta:             (K, F_in, F_out) float32
    returns:           (B, N, F_out, T) float32
    """
    B, N, F_in, T = x.shape
    K = cheb_polys.shape[0]
    F_out = theta.shape[-1]

    # Free reshape (no HBM transpose): columns flattened as (f, t), t minor.
    x2d = jnp.reshape(x, (B, N, F_in * T))

    # Per-time-step application of Theta_k on the flattened (f, t) axis is the
    # block-diagonal (over t) operator kron(Theta_k, I_T): (K, F_in*T, F_out*T).
    eye_t = jnp.eye(T, dtype=theta.dtype)
    theta_kron = jnp.reshape(
        theta[:, :, None, :, None] * eye_t[None, None, :, None, :],
        (K, F_in * T, F_out * T))

    kernel = functools.partial(_cheb_kernel, K=K)

    # Advisory cost hint for the XLA scheduler around the custom call.
    flops = 2 * B * K * (N * N * (F_in * T) + N * (F_in * T) * (F_out * T))
    bytes_accessed = 4 * (x2d.size + spatial_attention.size + cheb_polys.size
                          + theta_kron.size + B * N * F_out * T)

    out2d = pl.pallas_call(
        kernel,
        out_shape=jax.ShapeDtypeStruct((B, N, F_out * T), jnp.float32),
        grid_spec=pltpu.PrefetchScalarGridSpec(
            num_scalar_prefetch=0,
            grid=(B,),
            in_specs=[
                pl.BlockSpec((1, N, F_in * T), lambda b: (b, 0, 0)),
                pl.BlockSpec((1, N, N), lambda b: (b, 0, 0)),
                # grid-invariant operands: constant index_map -> fetched once
                pl.BlockSpec((K, N, N), lambda b: (0, 0, 0)),
                pl.BlockSpec((K, F_in * T, F_out * T), lambda b: (0, 0, 0)),
            ],
            out_specs=pl.BlockSpec((1, N, F_out * T), lambda b: (b, 0, 0)),
        ),
        compiler_params=pltpu.CompilerParams(
            dimension_semantics=("parallel",)),
        cost_estimate=pl.CostEstimate(flops=flops, transcendentals=0,
                                      bytes_accessed=bytes_accessed),
    )(x2d, spatial_attention, cheb_polys, theta_kron)

    # Free reshape back to the PyTorch output layout (B, N, F_out, T).
    return jnp.reshape(out2d, (B, N, F_out, T))


def _reference(x, spatial_attention, cheb_polys, theta):
    # pure-JAX reference mirroring the PyTorch loop
    B, N, F_in, T = x.shape
    K = cheb_polys.shape[0]
    F_out = theta.shape[-1]
    outs = []
    for t in range(T):
        g = x[:, :, :, t]                                           # (B, N, F_in)
        out = jnp.zeros((B, N, F_out), jnp.float32)
        for k in range(K):
            t_k_with_at = cheb_polys[k][None] * spatial_attention   # (B, N, N)
            rhs = jnp.einsum("bnm,bnf->bmf", t_k_with_at, g)        # permute(0,2,1) @ g
            out = out + jnp.einsum("bmf,fo->bmo", rhs, theta[k])
        outs.append(out[..., None])
    return jax.nn.relu(jnp.concatenate(outs, axis=-1))


if __name__ == "__main__":
    # small shapes consistent with the module
    B, N, F_in, F_out, T, K = 2, 16, 4, 8, 8, 3

    key = jax.random.PRNGKey(0)
    kx, ka, kc, kt = jax.random.split(key, 4)

    x = jax.random.normal(kx, (B, N, F_in, T), dtype=jnp.float32)
    spatial_attention = jax.random.uniform(ka, (B, N, N), dtype=jnp.float32)
    cheb_polys = jax.random.normal(kc, (K, N, N), dtype=jnp.float32)
    # deterministic stand-in for the uninitialized nn.Parameter Theta list
    theta = 0.1 * jax.random.normal(kt, (K, F_in, F_out), dtype=jnp.float32)

    out = cheb_conv_with_sat(x, spatial_attention, cheb_polys, theta)
    out = jax.block_until_ready(out)

    ref = _reference(x, spatial_attention, cheb_polys, theta)
    assert out.shape == (B, N, F_out, T)
    assert jnp.allclose(out, ref, atol=1e-4, rtol=1e-4)

    print("KERNEL_OK")
</pallas_src>

<mosaic_0001>
module attributes {stable_mosaic.version = 11 : i64} {
  func.func @_cheb_kernel(%arg0: i32, %arg1: memref<1x16x32xf32, #tpu.memory_space<vmem>>, %arg2: memref<1x16x16xf32, #tpu.memory_space<vmem>>, %arg3: memref<3x16x16xf32, #tpu.memory_space<vmem>>, %arg4: memref<3x32x64xf32, #tpu.memory_space<vmem>>, %arg5: memref<1x16x64xf32, #tpu.memory_space<vmem>>) attributes {dimension_semantics = [#tpu.dimension_semantics<parallel>], iteration_bounds = array<i64: 2>, scalar_prefetch = 0 : i64, scratch_operands = 0 : i64, tpu.core_type = #tpu.core_type<tc>, window_params = [{transform_indices = @transform_0, window_bounds = array<i64: 1, 16, 32>}, {transform_indices = @transform_1, window_bounds = array<i64: 1, 16, 16>}, {pipeline_mode = #tpu.pipeline_mode<synchronous>, transform_indices = @transform_2, window_bounds = array<i64: 3, 16, 16>}, {pipeline_mode = #tpu.pipeline_mode<synchronous>, transform_indices = @transform_3, window_bounds = array<i64: 3, 32, 64>}, {transform_indices = @transform_4, window_bounds = array<i64: 1, 16, 64>}]} {
    %c0 = arith.constant 0 : index
    %c0_0 = arith.constant 0 : index
    %c0_1 = arith.constant 0 : index
    %0 = vector.load %arg1[%c0, %c0_0, %c0_1] : memref<1x16x32xf32, #tpu.memory_space<vmem>>, vector<1x16x32xf32>
    %1 = vector.shape_cast %0 : vector<1x16x32xf32> to vector<16x32xf32>
    %c0_2 = arith.constant 0 : index
    %c0_3 = arith.constant 0 : index
    %c0_4 = arith.constant 0 : index
    %2 = vector.load %arg2[%c0_2, %c0_3, %c0_4] : memref<1x16x16xf32, #tpu.memory_space<vmem>>, vector<1x16x16xf32>
    %3 = vector.shape_cast %2 : vector<1x16x16xf32> to vector<16x16xf32>
    %cst = arith.constant 0.000000e+00 : f32
    %4 = vector.broadcast %cst : f32 to vector<16x64xf32>
    %c0_5 = arith.constant 0 : index
    %c0_6 = arith.constant 0 : index
    %c0_7 = arith.constant 0 : index
    %5 = vector.load %arg3[%c0_5, %c0_6, %c0_7] : memref<3x16x16xf32, #tpu.memory_space<vmem>>, vector<1x16x16xf32>
    %6 = vector.shape_cast %5 : vector<1x16x16xf32> to vector<16x16xf32>
    %7 = arith.mulf %6, %3 : vector<16x16xf32>
    %cst_8 = arith.constant dense<0.000000e+00> : vector<16x32xf32>
    %8 = tpu.matmul %7, %1, %cst_8 {dimension_numbers = #tpu.dot_dimension_numbers<[0], [0], [1], [1], [0, 1, 1, 1], [], []>} : vector<16x16xf32>, vector<16x32xf32>, vector<16x32xf32> -> vector<16x32xf32>
    %c0_9 = arith.constant 0 : index
    %c0_10 = arith.constant 0 : index
    %c0_11 = arith.constant 0 : index
    %9 = vector.load %arg4[%c0_9, %c0_10, %c0_11] : memref<3x32x64xf32, #tpu.memory_space<vmem>>, vector<1x32x64xf32>
    %10 = vector.shape_cast %9 : vector<1x32x64xf32> to vector<32x64xf32>
    %cst_12 = arith.constant dense<0.000000e+00> : vector<16x64xf32>
    %11 = tpu.matmul %8, %10, %cst_12 {dimension_numbers = #tpu.dot_dimension_numbers<[1], [0], [0], [1], [0, 0, 1, 1], [], []>} : vector<16x32xf32>, vector<32x64xf32>, vector<16x64xf32> -> vector<16x64xf32>
    %12 = arith.addf %4, %11 : vector<16x64xf32>
    %c1 = arith.constant 1 : index
    %c0_13 = arith.constant 0 : index
    %c0_14 = arith.constant 0 : index
    %13 = vector.load %arg3[%c1, %c0_13, %c0_14] : memref<3x16x16xf32, #tpu.memory_space<vmem>>, vector<1x16x16xf32>
    %14 = vector.shape_cast %13 : vector<1x16x16xf32> to vector<16x16xf32>
    %15 = arith.mulf %14, %3 : vector<16x16xf32>
    %cst_15 = arith.constant dense<0.000000e+00> : vector<16x32xf32>
    %16 = tpu.matmul %15, %1, %cst_15 {dimension_numbers = #tpu.dot_dimension_numbers<[0], [0], [1], [1], [0, 1, 1, 1], [], []>} : vector<16x16xf32>, vector<16x32xf32>, vector<16x32xf32> -> vector<16x32xf32>
    %c1_16 = arith.constant 1 : index
    %c0_17 = arith.constant 0 : index
    %c0_18 = arith.constant 0 : index
    %17 = vector.load %arg4[%c1_16, %c0_17, %c0_18] : memref<3x32x64xf32, #tpu.memory_space<vmem>>, vector<1x32x64xf32>
    %18 = vector.shape_cast %17 : vector<1x32x64xf32> to vector<32x64xf32>
    %cst_19 = arith.constant dense<0.000000e+00> : vector<16x64xf32>
    %19 = tpu.matmul %16, %18, %cst_19 {dimension_numbers = #tpu.dot_dimension_numbers<[1], [0], [0], [1], [0, 0, 1, 1], [], []>} : vector<16x32xf32>, vector<32x64xf32>, vector<16x64xf32> -> vector<16x64xf32>
    %20 = arith.addf %12, %19 : vector<16x64xf32>
    %c2 = arith.constant 2 : index
    %c0_20 = arith.constant 0 : index
    %c0_21 = arith.constant 0 : index
    %21 = vector.load %arg3[%c2, %c0_20, %c0_21] : memref<3x16x16xf32, #tpu.memory_space<vmem>>, vector<1x16x16xf32>
    %22 = vector.shape_cast %21 : vector<1x16x16xf32> to vector<16x16xf32>
    %23 = arith.mulf %22, %3 : vector<16x16xf32>
    %cst_22 = arith.constant dense<0.000000e+00> : vector<16x32xf32>
    %24 = tpu.matmul %23, %1, %cst_22 {dimension_numbers = #tpu.dot_dimension_numbers<[0], [0], [1], [1], [0, 1, 1, 1], [], []>} : vector<16x16xf32>, vector<16x32xf32>, vector<16x32xf32> -> vector<16x32xf32>
    %c2_23 = arith.constant 2 : index
    %c0_24 = arith.constant 0 : index
    %c0_25 = arith.constant 0 : index
    %25 = vector.load %arg4[%c2_23, %c0_24, %c0_25] : memref<3x32x64xf32, #tpu.memory_space<vmem>>, vector<1x32x64xf32>
    %26 = vector.shape_cast %25 : vector<1x32x64xf32> to vector<32x64xf32>
    %cst_26 = arith.constant dense<0.000000e+00> : vector<16x64xf32>
    %27 = tpu.matmul %24, %26, %cst_26 {dimension_numbers = #tpu.dot_dimension_numbers<[1], [0], [0], [1], [0, 0, 1, 1], [], []>} : vector<16x32xf32>, vector<32x64xf32>, vector<16x64xf32> -> vector<16x64xf32>
    %28 = arith.addf %20, %27 : vector<16x64xf32>
    %cst_27 = arith.constant 0.000000e+00 : f32
    %29 = vector.broadcast %cst_27 : f32 to vector<16x64xf32>
    %30 = arith.maximumf %28, %29 : vector<16x64xf32>
    %c0_28 = arith.constant 0 : index
    %c0_29 = arith.constant 0 : index
    %c0_30 = arith.constant 0 : index
    %31 = vector.load %arg5[%c0_28, %c0_29, %c0_30] : memref<1x16x64xf32, #tpu.memory_space<vmem>>, vector<1x16x64xf32>
    %32 = vector.shape_cast %31 : vector<1x16x64xf32> to vector<16x64xf32>
    %33 = vector.shape_cast %30 : vector<16x64xf32> to vector<1x16x64xf32>
    tpu.vector_store %arg5[%c0_28, %c0_29, %c0_30], %33 {strides = array<i32>} : memref<1x16x64xf32, #tpu.memory_space<vmem>>, vector<1x16x64xf32>,
    return
  }
  func.func @transform_0(%arg0: i32) -> (i32, i32, i32) {
    %c0_i32 = arith.constant 0 : i32
    %c0_i32_0 = arith.constant 0 : i32
    %c0_i32_1 = arith.constant 0 : i32
    return %arg0, %c0_i32, %c0_i32_0 : i32, i32, i32
  }
  func.func @transform_1(%arg0: i32) -> (i32, i32, i32) {
    %c0_i32 = arith.constant 0 : i32
    %c0_i32_0 = arith.constant 0 : i32
    %c0_i32_1 = arith.constant 0 : i32
    return %arg0, %c0_i32, %c0_i32_0 : i32, i32, i32
  }
  func.func @transform_2(%arg0: i32) -> (i32, i32, i32) {
    %c0_i32 = arith.constant 0 : i32
    %c0_i32_0 = arith.constant 0 : i32
    %c0_i32_1 = arith.constant 0 : i32
    %c0_i32_2 = arith.constant 0 : i32
    return %c0_i32, %c0_i32_0, %c0_i32_1 : i32, i32, i32
  }
  func.func @transform_3(%arg0: i32) -> (i32, i32, i32) {
    %c0_i32 = arith.constant 0 : i32
    %c0_i32_0 = arith.constant 0 : i32
    %c0_i32_1 = arith.constant 0 : i32
    %c0_i32_2 = arith.constant 0 : i32
    return %c0_i32, %c0_i32_0, %c0_i32_1 : i32, i32, i32
  }
  func.func @transform_4(%arg0: i32) -> (i32, i32, i32) {
    %c0_i32 = arith.constant 0 : i32
    %c0_i32_0 = arith.constant 0 : i32
    %c0_i32_1 = arith.constant 0 : i32
    return %arg0, %c0_i32, %c0_i32_0 : i32, i32, i32
  }
}

</mosaic_0001>

<bundles_post_ra>
// kernel: tpu_custom_call.1
= control target key start
LH: loop header
LB: loop body
LE: loop exit
PB: predicated region body
PF: predicated region fallthrough
CT: control target
= control target key end

     0   :  { %s1814_s0 = inlined_call_operand.hbm [shape: f32[2,16,32], index: 0, kind: input, shape index: {}]   ;;  %s1815_s1 = inlined_call_operand.hbm [shape: f32[2,16,16], index: 1, kind: input, shape index: {}]   ;;  %s1816_s2 = inlined_call_operand.hbm [shape: f32[3,16,16], index: 2, kind: input, shape index: {}]   ;;  %s1817_s3 = inlined_call_operand.hbm [shape: f32[3,32,64], index: 3, kind: input, shape index: {}]   ;;  %s1818_s4 = inlined_call_operand.hbm [shape: f32[2,16,64], index: 4, kind: output, shape index: {}]  }
   0x1   :  { %1826 = sst [smem:[#allocation16_spill]] %s1814_s0 }
   0x2   :  { %9 = vsyncpa [#allocation3], 0 }
   0x3   :  { %11 = vsyncpa [#allocation3 + $0x1], 0 }
   0x4   :  { %12 = vsyncpa [#allocation6], 0 }
   0x5   :  { %14 = vsyncpa [#allocation6 + $0x1], 0 }
   0x6   :  { %15 = vsyncpa [#allocation9], 0 }
   0x7   :  { %16 = vsyncpa [#allocation4], 0 }
   0x8   :  { %18 = vsyncpa [#allocation4 + $0x1], 0  ;;  %s1505_s15 = smov 0   ;;  %s1507_s16 = smov 0  }
   0x9   :  { %s1509_s17 = smov 0   ;;  %s1511_s18 = smov 0  }
   0xa LB: > { %s1526_s19 = sadd.s32 4294967295, %s1469_s18   ;;  %s1037_s20 = sadd.s32 4294967294, %s1469_s18   ;;  %s1469_s18 = sphi %s1511_s18, %s1848_s18   ;;  %s1465_s17 = sphi %s1509_s17, %s1847_s17   ;;  %s1461_s16 = sphi %s1507_s16, %s1846_s16   ;;  %s1457_s15 = sphi %s1505_s15, %s1845_s15  }
   0xb   : > { %p44_p0 = scmp.ne.s32.totalorder %s1461_s16, %s1457_s15  ;;  %p1819_p1 = scmp.eq.s32.totalorder %s1526_s19, 0 }
   0xc   : > { %p142_p3 = scmp.eq.s32.totalorder %s1037_s20, 1  ;;  %p1038_p5 = scmp.ge.s32.totalorder %s1469_s18, 1 }
   0xd   : > { %p1535_p4 = por %p1819_p1, %p44_p0  ;;  %p149_p7 = scmp.lt.s32.totalorder %s1469_s18, 3 }
   0xe   : > { %p1540_p6 = por %p142_p3, %p44_p0  ;;  %s1471_s24 = smov [#allocation7]  }
   0xf   : > { %s1827_s21 = scalar_select %p1535_p4, 1, 0 }
  0x10   : > { %s1828_s22 = scalar_select %p1540_p6, 1, 0 }
  0x11   : > { %p1545_p8 = pnand %p1038_p5, %p149_p7  ;;  %s161_s25 = sshll.u32 %s1471_s24, 4  ;;  %s1549_s25 = int_to_ptr.vmem [resolvable:$true] %s161_s25 }
  0x12   : > { %s1472_s27 = smov [#allocation8]   ;;  %s1275_s5 = scalar_lea.hbm %s1816_s2, 768 }
  0x13   : > { %p1212_p9 = pneg %p1545_p8  ;;  %s174_s28 = sshll.u32 %s1472_s27, 4  ;;  %s1560_s28 = int_to_ptr.vmem [resolvable:$true] %s174_s28 }
  0x14   : > { %p1276_p12 = scmp.ne.s32.totalorder %s1816_s2, %s1275_s5  ;;  %p1282_p5 = scmp.lt.u32.totalorder %s1275_s5, %s1816_s2 }
  0x15   : > { %p1556_p11 = pnand %p1212_p9, %p1819_p1 }
  0x17   : > { %p1277_p13 = pneg %p1556_p11 }
  0x19   : > { %p1278_p0 = pnand %p1277_p13, %p1276_p12 }
  0x1b   : > { %p1279_p3 = pneg %p1278_p0 }
  0x1d   : > { %p1284_p7 = pnand %p1282_p5, %p1279_p3 }
  0x1f   : > { %1287 = shalt.err (!%p1284_p7)
}
  0x20   : > { %s1288_s10 = scalar_lea.vmem %s1549_s25, 768  ;;  %p1296_p2 = scmp.lt.s32.totalorder %s1549_s25, %s1549_s25 }
  0x21   : > { %p1289_p9 = scmp.ne.s32.totalorder %s1549_s25, %s1288_s10  ;;  %p1297_p12 = scmp.lt.s32.totalorder %s1288_s10, %s1288_s10 }
  0x23   : > { %p1291_p10 = pnand %p1289_p9, %p1277_p13  ;;  %p1298_p0 = por %p1297_p12, %p1296_p2 }
  0x25   : > { %p1292_p1 = pneg %p1291_p10 }
  0x27   : > { %p1299_p6 = pnand %p1298_p0, %p1292_p1 }
  0x29   : > { %1302 = shalt.err (!%p1299_p6)
}
  0x2a   : > { %s1820_s11 = smov 128   ;;  %s1822_s12 = smov 8  }
  0x2b   : > { %1215 = dma.hbm_to_vmem [thread:$0]  (!%p1556_p11), %s1816_s2, 768, %s1549_s25, [#allocation6], %s1820_s11, %s1820_s11, %s1822_s12  }
  0x2c   : > { %s1303_s27 = scalar_lea.hbm %s1817_s3, 1536 }
  0x2d   : > { %p1304_p1 = scmp.ne.s32.totalorder %s1817_s3, %s1303_s27  ;;  %p1310_p10 = scmp.lt.u32.totalorder %s1303_s27, %s1817_s3 }
  0x2f   : > { %p1306_p2 = pnand %p1304_p1, %p1277_p13 }
  0x31   : > { %p1307_p6 = pneg %p1306_p2 }
  0x33   : > { %p1312_p3 = pnand %p1310_p10, %p1307_p6 }
  0x35   : > { %1315 = shalt.err (!%p1312_p3)
}
  0x36   : > { %s1316_s25 = scalar_lea.vmem %s1560_s28, 1536  ;;  %p1324_p12 = scmp.lt.s32.totalorder %s1560_s28, %s1560_s28 }
  0x37   : > { %p1317_p5 = scmp.ne.s32.totalorder %s1560_s28, %s1316_s25  ;;  %p1325_p0 = scmp.lt.s32.totalorder %s1316_s25, %s1316_s25 }
  0x39   : > { %p1319_p7 = pnand %p1317_p5, %p1277_p13  ;;  %p1326_p1 = por %p1325_p0, %p1324_p12 }
  0x3b   : > { %p1320_p9 = pneg %p1319_p7 }
  0x3d   : > { %p1327_p2 = pnand %p1326_p1, %p1320_p9 }
  0x3f   : > { %1330 = shalt.err (!%p1327_p2)
}
  0x40   : > { %1218 = dma.hbm_to_vmem [thread:$0]  (!%p1556_p11), %s1817_s3, 1536, %s1560_s28, [#allocation9], %s1820_s11, %s1820_s11, %s1822_s12  }
  0x41   : > { %s1621_s26 = sadd.s32 1, %s1469_s18   ;;  %s31_s9 = sadd.s32 1, %s1465_s17 }
  0x42   : > { %s28_s10 = ssub.s32 %s1469_s18, %s1621_s26  ;;  %p38_p13 = scmp.ne.s32.totalorder %s1465_s17, %s1461_s16 }
  0x43   : > { %p29_p6 = scmp.eq.s32.totalorder %s28_s10, 0  ;;  %p39_p10 = scmp.eq.s32.totalorder %s1469_s18, 0 }
  0x44   : > { %p1831_p3 = scmp.eq.s32.totalorder %s1526_s19, 1  ;;  %p1232_p7 = scmp.lt.s32.totalorder %s1469_s18, 2 }
  0x45   : > { %s1637_s14 = scalar_select %p29_p6, %s1465_s17, %s31_s9  }
  0x46   : > { %p1631_p5 = por %p1831_p3, %p38_p13  ;;  %p40_p9 = por %p39_p10, %p38_p13 }
  0x47   : > { %s188_s20 = sand.u32 1, %s1465_s17   ;;  %s1071_s28 = sshll.u32 %s1469_s18, 8 }
  0x48   : > { %s1832_s13 = scalar_select %p1631_p5, 1, 0 }
  0x49   : > { %s1042_s24 = sshll.u32 %s188_s20, 4  ;;  %s1833_s0 = sld [smem:[#allocation16_spill]] }
  0x4a   : > { %s192_s5 = scalar_lea.vmem [#allocation2], %s1042_s24  ;;  %p1648_p11 = pnand %p1232_p7, %p40_p9 }
  0x4b   : > { %s199_s6 = sshll.u32 %s192_s5, 4  ;;  %s1655_s9 = scalar_lea.hbm %s1815_s1, %s1071_s28  ;;  %s1646_s6 = int_to_ptr.vmem [resolvable:$true] %s199_s6 }
  0x4c   : > { %s213_s10 = scalar_lea.vmem [#allocation5], %s1042_s24  ;;  %s1659_s29 = scalar_lea.sflag [#allocation3], %s188_s20 }
  0x4d   : > { %s1657_s27 = sshll.u32 %s213_s10, 4  ;;  %p1333_p0 = pneg %p1648_p11  ;;  %s1691_s27 = int_to_ptr.vmem [resolvable:$true] %s1657_s27 }
  0x4f   : > { %s1644_s30 = scalar_lea.hbm %s1833_s0, %s1071_s28  ;;  %s1336_s7 = scalar_lea.hbm %s1833_s0, 512 }
  0x50   : > { %s1331_s5 = scalar_lea.hbm %s1644_s30, 256  ;;  %p1337_p13 = scmp.lt.u32.totalorder %s1644_s30, %s1833_s0 }
  0x51   : > { %p1332_p12 = scmp.ne.s32.totalorder %s1644_s30, %s1331_s5  ;;  %p1338_p6 = scmp.lt.u32.totalorder %s1336_s7, %s1331_s5 }
  0x52   : > { %p1340_p3 = scmp.lt.u32.totalorder %s1331_s5, %s1644_s30 }
  0x53   : > { %p1334_p1 = pnand %p1333_p0, %p1332_p12  ;;  %p1339_p10 = por %p1338_p6, %p1337_p13 }
  0x55   : > { %p1335_p2 = pneg %p1334_p1  ;;  %p1341_p7 = por %p1340_p3, %p1339_p10 }
  0x57   : > { %p1342_p9 = pnand %p1341_p7, %p1335_p2 }
  0x59   : > { %1345 = shalt.err (!%p1342_p9)
}
  0x5a   : > { %s1346_s20 = scalar_lea.vmem %s1646_s6, 256  ;;  %s1475_s11 = smov [#allocation2]  }
  0x5b   : > { %p1347_p12 = scmp.ne.s32.totalorder %s1646_s6, %s1346_s20  ;;  %s1351_s12 = sshll.u32 %s1475_s11, 4  ;;  %s1352_s12 = int_to_ptr.vmem [resolvable:$false] %s1351_s12 }
  0x5c   : > { %s1353_s24 = scalar_lea.vmem %s1352_s12, 512  ;;  %p1354_p4 = scmp.lt.s32.totalorder %s1646_s6, %s1352_s12 }
  0x5d   : > { %p1349_p1 = pnand %p1347_p12, %p1333_p0  ;;  %p1355_p13 = scmp.lt.s32.totalorder %s1353_s24, %s1346_s20 }
  0x5f   : > { %p1350_p5 = pneg %p1349_p1  ;;  %p1356_p6 = por %p1355_p13, %p1354_p4 }
  0x61   : > { %p1357_p10 = pnand %p1356_p6, %p1350_p5 }
  0x63   : > { %1360 = shalt.err (!%p1357_p10)
}
  0x64   : > { %s1835_s10 = smov 8   ;;  %s1836_s5 = smov 128  }
  0x65   : > { %1222 = dma.hbm_to_vmem [thread:$0]  (!%p1648_p11), %s1644_s30, 256, %s1646_s6, %s1659_s29, %s1836_s5, %s1836_s5, %s1835_s10  }
  0x66   : > { %s209_s7 = sand.u32 1, %s1469_s18   ;;  %s1361_s28 = scalar_lea.hbm %s1655_s9, 256 }
  0x67   : > { %s1694_s8 = scalar_lea.sflag [#allocation6], %s209_s7  ;;  %p1362_p4 = scmp.ne.s32.totalorder %s1655_s9, %s1361_s28 }
  0x68   : > { %s1366_s12 = scalar_lea.hbm %s1815_s1, 512  ;;  %p1367_p3 = scmp.lt.u32.totalorder %s1655_s9, %s1815_s1 }
  0x69   : > { %p1364_p5 = pnand %p1362_p4, %p1333_p0  ;;  %p1368_p7 = scmp.lt.u32.totalorder %s1366_s12, %s1361_s28 }
  0x6a   : > { %p1370_p12 = scmp.lt.u32.totalorder %s1361_s28, %s1655_s9 }
  0x6b   : > { %p1365_p2 = pneg %p1364_p5  ;;  %p1369_p9 = por %p1368_p7, %p1367_p3 }
  0x6d   : > { %p1371_p1 = por %p1370_p12, %p1369_p9 }
  0x6f   : > { %p1372_p13 = pnand %p1371_p1, %p1365_p2 }
  0x71   : > { %1375 = shalt.err (!%p1372_p13)
}
  0x72   : > { %s1376_s30 = scalar_lea.vmem %s1691_s27, 256  ;;  %s1476_s6 = smov [#allocation5]  }
  0x73   : > { %p1377_p6 = scmp.ne.s32.totalorder %s1691_s27, %s1376_s30  ;;  %s1381_s29 = sshll.u32 %s1476_s6, 4  ;;  %s1382_s29 = int_to_ptr.vmem [resolvable:$false] %s1381_s29 }
  0x74   : > { %s1383_s0 = scalar_lea.vmem %s1382_s29, 512  ;;  %p1384_p5 = scmp.lt.s32.totalorder %s1691_s27, %s1382_s29 }
  0x75   : > { %p1379_p10 = pnand %p1377_p6, %p1333_p0  ;;  %p1385_p3 = scmp.lt.s32.totalorder %s1383_s0, %s1376_s30 }
  0x77   : > { %p1380_p4 = pneg %p1379_p10  ;;  %p1386_p7 = por %p1385_p3, %p1384_p5 }
  0x79   : > { %p1387_p9 = pnand %p1386_p7, %p1380_p4 }
  0x7b   : > { %1390 = shalt.err (!%p1387_p9)
}
  0x7c   : > { %1225 = dma.hbm_to_vmem [thread:$0]  (!%p1648_p11), %s1655_s9, 256, %s1691_s27, %s1694_s8, %s1836_s5, %s1836_s5, %s1835_s10  }
  0x7d   : > { %232 = sbr.rel (%p1545_p8) target bundleno = 943 (0x3af), region = 36  ;;  %s1726_s7 = sand.u32 (!%p1545_p8), 1, %s1461_s16  }
  0x7e   : > { %s1729_s28 = sshll.u32 (!%p1545_p8), %s1726_s7, 4  ;;  %s235_s25 = scalar_lea.sflag (!%p1545_p8), [#allocation3], %s1726_s7 }
  0x7f   : > { %s238_s20 = scalar_lea.vmem (!%p1545_p8), [#allocation2], %s1729_s28  ;;  %p1837_p0 = scmp.ne.s32.totalorder (!%p1545_p8), %s1827_s21, 0 }
  0x84   : > { %1436 = dma.done.wait (%p1837_p0), %s235_s25, 256  }
  0x85   : > { %1438 = vsyncadd (%p1837_p0), %s235_s25, 4294967040  ;;  %s243_s23 = sand.u32 1, %s1526_s19   ;;  %s247_s27 = scalar_lea.vmem [#allocation5], %s1729_s28 }
  0x86   : > { %s244_s9 = scalar_lea.sflag [#allocation6], %s243_s23 }
  0x87   : > { %1440 = dma.done.wait (%p1837_p0), %s244_s9, 256  }
  0x88   : > { %1442 = vsyncadd (%p1837_p0), %s244_s9, 4294967040  ;;  %p1838_p8 = scmp.eq.s32.totalorder %s1526_s19, 0 }
  0x8a   : > { %1444 = dma.done.wait (%p1838_p8), [#allocation6], 768   ;;  %p1839_p11 = pmov %p1838_p8 }
  0x8b   : > { %p1840_p2 = pmov %p1838_p8 }
  0x8c   : > { %1446 = vsyncadd (%p1839_p11), [#allocation6], 4294966528 }
  0x8d   : > { %1448 = dma.done.wait (%p1840_p2), [#allocation9], 1536   ;;  %p1841_p12 = pmov %p1840_p2 }
  0x8e   : > { %v287_v0 = vld [vmem:[%s247_s27] sm:$0xff]  ;;  %v288_v2 = vld [vmem:[%s247_s27 + $0x8] sm:$0xff]  ;;  %vm325_vm0 = vcmask 130048   ;;  %vm534_vm1 = vcmask 261120   ;;  %s284_s21 = scalar_lea.vmem [#allocation10], %s1729_s28  ;;  %s1073_s5 = sshll.u32 %s1526_s19, 8 }
  0x8f   : > { %1450 = vsyncadd (%p1841_p12), [#allocation9], 4294965760  ;;  %v412_v1 = vld [vmem:[#allocation7 + $0x10] sm:$0xff]  ;;  %v413_v4 = vld [vmem:[#allocation7 + $0x18] sm:$0xff]  ;;  %s922_s10 = sshll.u32 %s284_s21, 4  ;;  %vm905_vm2 = vcmask 523264   ;;  %s1768_s12 = scalar_lea.hbm %s1818_s4, %s1073_s5  ;;  %s1770_s10 = int_to_ptr.vmem [resolvable:$true] %s922_s10 }
  0x90   : > { %v414_v3 = vmul.f32 %v412_v1, %v287_v0  ;;  %v285_v5 = vld [vmem:[%s238_s20] sm:$0xff]  ;;  %v286_v6 = vld [vmem:[%s238_s20 + $0x8] sm:$0xff]  ;;  %v415_v8 = vmul.f32 %v413_v4, %v288_v2  ;;  %s909_s24 = scalar_lea.sflag [#allocation4], %s1726_s7  ;;  %s1391_s19 = scalar_lea.vmem %s1770_s10, 256 }
  0x91   : > { %v1158_v7 = vpack.c.bf16 %v286_v6, %v285_v5  ;;  %v289_v9 = vld [vmem:[#allocation7] sm:$0xff]  ;;  %v290_v10 = vld [vmem:[#allocation7 + $0x8] sm:$0xff]  ;;  %v530_v17 = vld [vmem:[#allocation8 + $0x20] sm:$0xff]  ;;  %p1392_p1 = scmp.ne.s32.totalorder %s1770_s10, %s1391_s19  ;;  %p1842_p13 = scmp.ne.s32.totalorder %s1832_s13, 0 }
  0x92   : > { %416 = vxpose.xlu0.b32.start [1/2] (short) (narrow) %v414_v3, 16  ;;  %v698_v11 = vld [vmem:[#allocation7 + $0x20] sm:$0xff]  ;;  %v291_v12 = vmul.f32 %v289_v9, %v287_v0  ;;  %v699_v14 = vld [vmem:[#allocation7 + $0x28] sm:$0xff]  ;;  %v292_v15 = vmul.f32 %v290_v10, %v288_v2  ;;  %v531_v18 = vld [vmem:[#allocation8 + $0x28] sm:$0xff]  ;;  %s1477_s30 = smov [#allocation10]  }
  0x93   : > { %1163 = vmatprep.subr.bf16.mxu1 %v1158_v7  ;;  %1159 = vmatprep.subr.bf16.mxu0 %v1158_v7  ;;  %v700_v13 = vmul.f32 %v698_v11, %v287_v0  ;;  %v701_v16 = vmul.f32 %v699_v14, %v288_v2  ;;  %v1166_v19 = vpack.c.bf16 %v531_v18, %v530_v17  ;;  %v532_v21 = vld [vmem:[#allocation8 + $0x30] sm:$0xff]  ;;  %v533_v22 = vld [vmem:[#allocation8 + $0x38] sm:$0xff]  ;;  %v407_v27 = vld [vmem:[#allocation8] sm:$0xff]  ;;  %p1393_p6 = pnand %p1392_p1, %p1842_p13  ;;  %s1395_s6 = sshll.u32 %s1477_s30, 4  ;;  %s1396_s6 = int_to_ptr.vmem [resolvable:$false] %s1395_s6 }
  0x94   : > { %1165 = vmatpush3.bf16.msra.mxu1 %v1158_v7  ;;  %1161 = vmatpush3.bf16.msra.mxu0 %v1158_v7  ;;  %v1170_v23 = vpack.c.bf16 %v533_v22, %v532_v21  ;;  %v408_v28 = vld [vmem:[#allocation8 + $0x8] sm:$0xff]  ;;  %v409_v29 = vld [vmem:[#allocation8 + $0x10] sm:$0xff]  ;;  %v410_v31 = vld [vmem:[#allocation8 + $0x18] sm:$0xff]  ;;  %s1397_s29 = scalar_lea.vmem %s1396_s6, 512  ;;  %p1398_p4 = scmp.lt.s32.totalorder %s1770_s10, %s1396_s6 }
  0x95   : > { %293 = vxpose.xlu1.b32.start [1/2] (short) (narrow) %v291_v12, 16  ;;  %1167 = vmatprep.subr.bf16.mxu1 %v1166_v19  ;;  %v1174_v30 = vpack.c.bf16 %v408_v28, %v407_v27  ;;  %v1178_v32 = vpack.c.bf16 %v410_v31, %v409_v29  ;;  %v816_v33 = vld [vmem:[#allocation8 + $0x40] sm:$0xff]  ;;  %v817_v34 = vld [vmem:[#allocation8 + $0x48] sm:$0xff]  ;;  %v818_v42 = vld [vmem:[#allocation8 + $0x50] sm:$0xff]  ;;  %p1394_p10 = pneg %p1393_p6  ;;  %p1399_p5 = scmp.lt.s32.totalorder %s1397_s29, %s1391_s19 }
  0x96   : > { %417 = vxpose.xlu0.b32.end [2/2] (short) (narrow) %v415_v8, 16  ;;  %v1186_v35 = vpack.c.bf16 %v817_v34, %v816_v33  ;;  %v819_v43 = vld [vmem:[#allocation8 + $0x58] sm:$0xff] }
  0x97   : > { %1175 = vmatprep.subr.bf16.mxu0 %v1174_v30  ;;  %v1190_v44 = vpack.c.bf16 %v819_v43, %v818_v42  ;;  %p1400_p3 = por %p1399_p5, %p1398_p4 }
  0x99   : > { %294 = vxpose.xlu1.b32.end [2/2] (short) (narrow) %v292_v15, 16  ;;  %p1401_p7 = pnand %p1400_p3, %p1394_p10 }
  0x9a   : > { %702 = vxpose.xlu0.b32.start [1/2] (short) (narrow) %v700_v13, 16 }
  0x9e   : > { %703 = vxpose.xlu0.b32.end [2/2] (short) (narrow) %v701_v16, 16 }
 0x112   : > { %v432_v20 = vpop.trf.xlu0 }
 0x113   : > { %1115 = vmatprep.mubr.msk.f32.mxu1 %vm325_vm0, %v432_v20 }
 0x115   : > { %v309_v25 = vpop.trf.xlu1 }
 0x116   : > { %v433_v24 = vpop.trf.xlu0  ;;  %1108 = vmatprep.mubr.msk.f32.mxu0 %vm325_vm0, %v309_v25 }
 0x117   : > { %1116 = vmatmul.mubr.msk.f32.vlgmr.msra.gmra.mrb[0].mxu1 %vm325_vm0, %v433_v24 }
 0x118   : > { %1169 = vmatpush3.bf16.msra.mxu1 %v1166_v19 }
 0x119   : > { %1171 = vmatprep.subr.bf16.mxu1 %v1170_v23  ;;  %v310_v26 = vpop.trf.xlu1 }
 0x11a   : > { %1109 = vmatmul.mubr.msk.f32.vlgmr.msra.gmra.mrb[0].mxu0 %vm325_vm0, %v310_v26  ;;  %v718_v36 = vpop.trf.xlu0 }
 0x11b   : > { %1177 = vmatpush3.bf16.msra.mxu0 %v1174_v30 }
 0x11c   : > { %1173 = vmatpush3.bf16.msra.mxu1 %v1170_v23  ;;  %1179 = vmatprep.subr.bf16.mxu0 %v1178_v32 }
 0x11d   : > { %1183 = vmatprep.subr.bf16.mxu1 %v1158_v7 }
 0x11e   : > { %v719_v39 = vpop.trf.xlu0 }
 0x11f   : > { %1181 = vmatpush3.bf16.msra.mxu0 %v1178_v32 }
 0x120   : > { %1187 = vmatprep.subr.bf16.mxu0 %v1186_v35 }
 0x1ea   : > { %v1117_v37 = vpop.f32.mrb[0].mxu1 }
 0x1eb   : > { %v520_v38 = vpop.f32.mrb[1].mxu1 }
 0x1ec   : > { %1126 = vmatprep.mubr.msk.f32.mxu1 %vm534_vm1, %v520_v38 }
 0x1ed   : > { %1127 = vmatmul.mubr.msk.f32.vlgmr.msra.gmra.mrb[2].mxu1 %vm534_vm1, %v1117_v37  ;;  %v1110_v40 = vpop.f32.mrb[0].mxu0 }
 0x1ee   : > { %1185 = vmatpush3.bf16.msra.mxu1 %v1158_v7  ;;  %1144 = vmatprep.mubr.msk.f32.mxu1 %vm325_vm0, %v718_v36  ;;  %v398_v41 = vpop.f32.mrb[1].mxu0 }
 0x1ef   : > { %1137 = vmatprep.mubr.msk.f32.mxu0 %vm534_vm1, %v398_v41 }
 0x1f0   : > { %1138 = vmatmul.mubr.msk.f32.vlgmr.msra.gmra.mrb[2].mxu0 %vm534_vm1, %v1110_v40 }
 0x1f1   : > { %1145 = vmatmul.mubr.msk.f32.vlgmr.msra.gmra.mrb[4].mxu1 %vm325_vm0, %v719_v39  ;;  %1189 = vmatpush3.bf16.msra.mxu0 %v1186_v35 }
 0x1f2   : > { %1191 = vmatprep.subr.bf16.mxu0 %v1190_v44 }
 0x1f5   : > { %1193 = vmatpush3.bf16.msra.mxu0 %v1190_v44 }
 0x2c0   : > { %v1128_v45 = vpop.f32.mrb[2].mxu1 }
 0x2c1   : > { %v607_v46 = vpop.f32.mrb[3].mxu1 }
 0x2c4   : > { %v1146_v47 = vpop.f32.mrb[4].mxu1 }
 0x2c5   : > { %v806_v48 = vpop.f32.mrb[5].mxu1 }
 0x2c6   : > { %1155 = vmatprep.mubr.msk.f32.mxu0 %vm534_vm1, %v806_v48 }
 0x2c7   : > { %1156 = vmatmul.mubr.msk.f32.vlgmr.msra.gmra.mrb[2].mxu0 %vm534_vm1, %v1146_v47 }
 0x39a   : > { %v1157_v49 = vpop.f32.mrb[2].mxu0 }
 0x39b   : > { %v1194_v50 = vadd.f32 %v1157_v49, %v1128_v45  ;;  %v892_v51 = vpop.f32.mrb[3].mxu0 }
 0x39c   : > { %v1195_v52 = vadd.f32 %v892_v51, %v607_v46 }
 0x39d   : > { %v904_v53 = vmax.f32 %v1194_v50, 0.0 }
 0x39e   : > { %v903_v54 = vmax.f32 %v1195_v52, 0.0 }
 0x39f   : > { %907 = vst.msk [vmem:[%s284_s21 + $0x8] sm:$0xff] %vm905_vm2, %v904_v53 }
 0x3a0   : > { %906 = vst.msk [vmem:[%s284_s21] sm:$0xff] %vm905_vm2, %v903_v54 }
 0x3a1   : > { %1404 = shalt.err (!%p1401_p7)
}
 0x3a2   : > { %s1405_s0 = scalar_lea.hbm %s1768_s12, 256  ;;  %s1409_s20 = scalar_lea.hbm %s1818_s4, 512 }
 0x3a3   : > { %p1406_p9 = scmp.ne.s32.totalorder %s1768_s12, %s1405_s0  ;;  %p1410_p11 = scmp.lt.u32.totalorder %s1768_s12, %s1818_s4 }
 0x3a4   : > { %p1411_p2 = scmp.lt.u32.totalorder %s1409_s20, %s1405_s0  ;;  %p1413_p1 = scmp.lt.u32.totalorder %s1405_s0, %s1768_s12 }
 0x3a5   : > { %p1407_p0 = pnand %p1406_p9, %p1842_p13 }
 0x3a6   : > { %p1412_p12 = por %p1411_p2, %p1410_p11 }
 0x3a7   : > { %p1408_p8 = pneg %p1407_p0 }
 0x3a8   : > { %p1414_p6 = por %p1413_p1, %p1412_p12 }
 0x3aa   : > { %p1415_p10 = pnand %p1414_p6, %p1408_p8 }
 0x3ac   : > { %1418 = shalt.err (!%p1415_p10)
}
 0x3ad   : > { %s1478_s27 = smov 128   ;;  %s1479_s21 = smov 8  }
 0x3ae   : > { %1210 = dma.vmem_to_hbm [thread:$0]  (%p1842_p13), %s1770_s10, 256, %s1768_s12, %s909_s24, %s1478_s27, %s1478_s27, %s1479_s21  }
 0x3af PF: > { %s937_s5 = sand.u32 1, %s1457_s15   ;;  %p1843_p4 = scmp.ne.s32.totalorder %s1828_s22, 0 }
 0x3b0   : > { %p1844_p5 = scmp.ge.s32.totalorder %s1469_s18, 2  ;;  %s938_s8 = scalar_lea.sflag [#allocation4], %s937_s5 }
 0x3b2   : > { %p1227_p3 = pnand %p1844_p5, %p1843_p4 }
 0x3b4   : > { %1452 = dma.done.wait (!%p1227_p3), %s938_s8, 256  }
 0x3b5   : > { %1454 = vsyncadd (!%p1227_p3), %s938_s8, 4294967040  ;;  %p21_p7 = scmp.ge.s32.totalorder %s1621_s26, 4   ;;  %s1845_s15 = smov %s1461_s16 }
 0x3b6   : > { %s1846_s16 = smov %s1465_s17  ;;  %s1847_s17 = smov %s1637_s14 }
 0x3b7   : > { %s1848_s18 = smov %s1621_s26  ;;  %23 = sbr.rel (!%p21_p7) target bundleno = 10 (0xa), region = 106 }
 0x3be   :  { %943 = vsyncpa [#allocation3], 1 }
 0x3bf   :  { %945 = vsyncpa [#allocation3 + $0x1], 1 }
 0x3c0   :  { %946 = vsyncpa [#allocation6], 1 }
 0x3c1   :  { %948 = vsyncpa [#allocation6 + $0x1], 1 }
 0x3c2   :  { %949 = vsyncpa [#allocation9], 1 }
 0x3c3   :  { %950 = vsyncpa [#allocation4], 1 }
 0x3c4   :  { %952 = vsyncpa [#allocation4 + $0x1], 1 }

</bundles_post_ra>
